<compile_context>
chip_gen: v6e
topology: v6e:2x2x1
jax: 0.10.0
libtpu: 0.0.40
codegen_flags: <defaults>
</compile_context>

<pallas_src>
import functools

import jax
import jax.numpy as jnp
from jax.experimental import pallas as pl
from jax.experimental.pallas import tpu as pltpu


# ---------------------------------------------------------------------------
# In-kernel helpers
# ---------------------------------------------------------------------------
def _layer_norm(y, gamma, beta, eps=1e-5):
    mean = jnp.mean(y, axis=-1, keepdims=True)
    var = jnp.mean((y - mean) ** 2, axis=-1, keepdims=True)
    return (y - mean) * jax.lax.rsqrt(var + eps) * gamma + beta


# ---------------------------------------------------------------------------
# Pallas kernel: full encoder stack.  grid = (batch_tiles, num_layers)
# ---------------------------------------------------------------------------
def encoder_stack_kernel(x_ref,
                         wqkv_ref, bqkv_ref, wo_ref, bo_ref,
                         g1_ref, be1_ref,
                         w1_ref, bf1_ref, w2_ref, bf2_ref,
                         g2_ref, be2_ref,
                         o_ref, act_ref,
                         *, num_heads, head_dim):
    l = pl.program_id(1)

    # First layer for this batch tile: load the activation into the resident
    # VMEM scratch; it stays there across the whole layer axis.
    @pl.when(l == 0)
    def _():
        act_ref[...] = x_ref[...]

    x = act_ref[...]                                   # (tb, S, D) float32
    tb, S, D = x.shape
    H, dh = num_heads, head_dim
    x2 = x.reshape(tb * S, D)
    scale = 1.0 / (float(dh) ** 0.5)

    # ---- fused Q/K/V projection: one (tb*S, D) x (D, 3*H*dh) MXU matmul ----
    qkv = jnp.dot(x2.astype(jnp.bfloat16), wqkv_ref[0],
                  preferred_element_type=jnp.float32) + bqkv_ref[0]
    q3 = (qkv[:, :H * dh] * scale).reshape(tb, S, H * dh)   # scale folded into q
    k3 = qkv[:, H * dh:2 * H * dh].reshape(tb, S, H * dh)
    v3 = qkv[:, 2 * H * dh:].reshape(tb, S, H * dh)

    # ---- scaled dot-product attention.  Heads are lane slices of the fused
    # projection; the remaining per-head loop only holds the small (S,S)
    # score / context einsums (no projection matmuls).  A fully head-batched
    # 4-D einsum would require a cross-sublane (b,S,H,dh)->(b,H,S,dh)
    # transpose, deliberately avoided here for Mosaic-lowering safety.
    ctx_heads = []
    for h in range(H):                                  # static unroll
        sl = slice(h * dh, (h + 1) * dh)
        q = q3[:, :, sl].astype(jnp.bfloat16)
        k = k3[:, :, sl].astype(jnp.bfloat16)
        v = v3[:, :, sl].astype(jnp.bfloat16)
        s = jnp.einsum('bqe,bke->bqk', q, k,
                       preferred_element_type=jnp.float32)
        s = s - jnp.max(s, axis=-1, keepdims=True)
        p = jnp.exp(s)
        p = p * pl.reciprocal(jnp.sum(p, axis=-1, keepdims=True), approx=True)
        ctx_heads.append(jnp.einsum('bqk,bke->bqe', p.astype(jnp.bfloat16), v,
                                    preferred_element_type=jnp.float32))
    ctx = jnp.concatenate(ctx_heads, axis=-1).reshape(tb * S, H * dh)

    # ---- output projection + residual + layernorm (f32) --------------------
    attn = jnp.dot(ctx.astype(jnp.bfloat16), wo_ref[0],
                   preferred_element_type=jnp.float32) + bo_ref[0]
    y2 = _layer_norm(x2 + attn, g1_ref[0], be1_ref[0])

    # ---- feed-forward (Linear -> ReLU -> Linear) + residual + layernorm ----
    h1 = jnp.maximum(jnp.dot(y2.astype(jnp.bfloat16), w1_ref[0],
                             preferred_element_type=jnp.float32) + bf1_ref[0],
                     0.0)
    ff = jnp.dot(h1.astype(jnp.bfloat16), w2_ref[0],
                 preferred_element_type=jnp.float32) + bf2_ref[0]
    z2 = _layer_norm(y2 + ff, g2_ref[0], be2_ref[0])

    act_ref[...] = z2.reshape(tb, S, D)

    # Only the last layer writes this batch tile's output block back to HBM.
    @pl.when(l == pl.num_programs(1) - 1)
    def _():
        o_ref[...] = act_ref[...]


# ---------------------------------------------------------------------------
# pallas_call wrapper
# ---------------------------------------------------------------------------
@functools.partial(jax.jit, static_argnames=("num_heads", "head_dim"))
def encoder_stack_pallas(x, stacked, *, num_heads, head_dim):
    B, S, D = x.shape
    L = stacked[0].shape[0]
    H, dh = num_heads, head_dim
    F = stacked[6].shape[-1]                     # w1: (L, D, F)
    tb = 1                                       # one sequence per grid step

    act_spec = pl.BlockSpec((tb, S, D), lambda b, l: (b, 0, 0))
    weight_specs = [
        pl.BlockSpec((1,) + tuple(w.shape[1:]), lambda b, l: (l, 0, 0))
        for w in stacked
    ]

    # Advisory cost estimate so XLA can schedule the surrounding embedding /
    # positional-encoding ops around the custom call.
    flops = int(L * B * S * (2 * D * 3 * H * dh          # fused QKV projection
                             + 4 * H * S * dh            # scores + context
                             + 2 * H * dh * D            # output projection
                             + 4 * D * F))               # FFN
    transcendentals = int(L * B * H * S * S)
    bytes_accessed = int(2 * x.size * x.dtype.itemsize
                         + B * sum(int(w.size) * w.dtype.itemsize
                                   for w in stacked))

    kernel = functools.partial(encoder_stack_kernel,
                               num_heads=H, head_dim=dh)

    return pl.pallas_call(
        kernel,
        out_shape=jax.ShapeDtypeStruct((B, S, D), jnp.float32),
        grid_spec=pltpu.PrefetchScalarGridSpec(
            num_scalar_prefetch=0,
            grid=(B // tb, L),
            in_specs=[act_spec] + weight_specs,
            out_specs=act_spec,
            scratch_shapes=[pltpu.VMEM((tb, S, D), jnp.float32)],
        ),
        compiler_params=pltpu.CompilerParams(
            # Batch axis shardable across TensorCores (v7x megacore);
            # layer axis is a sequential dependency.
            dimension_semantics=("parallel", "arbitrary"),
            vmem_limit_bytes=32 * 1024 * 1024,
        ),
        cost_estimate=pl.CostEstimate(flops=flops,
                                      transcendentals=transcendentals,
                                      bytes_accessed=bytes_accessed),
    )(x, *stacked)


# ---------------------------------------------------------------------------
# Glue (plain JAX): embedding lookup, positional encoding
# ---------------------------------------------------------------------------
def positional_encoding(seq_len, dim):
    # Matches the source module's formula: phase = pos / 1e4**(d/dim);
    # even channels take sin(phase), odd channels take cos(phase).
    pos = jnp.arange(seq_len, dtype=jnp.float32).reshape(1, -1, 1)
    d = jnp.arange(dim, dtype=jnp.float32).reshape(1, 1, -1)
    phase = pos / (1e4 ** (d / dim))
    even = (jnp.arange(dim).reshape(1, 1, -1) % 2) == 0
    return jnp.where(even, jnp.sin(phase), jnp.cos(phase))


def transformer_encoder(tokens, embedding, stacked_params, num_heads, head_dim):
    # TODO(synk): embedding lookup is a data-dependent row gather; it stays in
    # plain JAX (an in-kernel DMA gather is not worthwhile at these sizes).
    x = embedding[tokens].astype(jnp.float32)            # (B, S, D)
    S, D = x.shape[1], x.shape[2]
    x = x + positional_encoding(S, D)
    return encoder_stack_pallas(x, stacked_params,
                                num_heads=num_heads, head_dim=head_dim)


# ---------------------------------------------------------------------------
# Deterministic parameter init (per layer, then stacked with a leading L axis)
# ---------------------------------------------------------------------------
def init_stacked_params(key, num_layers, D, H, dh, F):
    def w(k, fan_in, shape):
        return jax.random.normal(k, shape, jnp.float32) / jnp.sqrt(jnp.float32(fan_in))

    per_layer = []
    for lk in jax.random.split(key, num_layers):
        ks = jax.random.split(lk, 6)
        wq = w(ks[0], D, (D, H * dh))        # heads fused along output columns
        wk = w(ks[1], D, (D, H * dh))
        wv = w(ks[2], D, (D, H * dh))
        wqkv = jnp.concatenate([wq, wk, wv], axis=-1)        # (D, 3*H*dh)
        bqkv = jnp.zeros((1, 3 * H * dh), jnp.float32)
        wo = w(ks[3], H * dh, (H * dh, D)); bo = jnp.zeros((1, D), jnp.float32)
        g1 = jnp.ones((1, D), jnp.float32); be1 = jnp.zeros((1, D), jnp.float32)
        w1 = w(ks[4], D, (D, F));           bf1 = jnp.zeros((1, F), jnp.float32)
        w2 = w(ks[5], F, (F, D));           bf2 = jnp.zeros((1, D), jnp.float32)
        g2 = jnp.ones((1, D), jnp.float32); be2 = jnp.zeros((1, D), jnp.float32)
        per_layer.append((wqkv, bqkv, wo, bo, g1, be1,
                          w1, bf1, w2, bf2, g2, be2))

    stacked = [jnp.stack(ws, axis=0) for ws in zip(*per_layer)]
    # Matmul operands in bf16 (f32 accumulation in-kernel); biases / LN stay f32.
    for idx in (0, 2, 6, 8):                 # wqkv, wo, w1, w2
        stacked[idx] = stacked[idx].astype(jnp.bfloat16)
    return tuple(stacked)


if __name__ == "__main__":
    # Small, forward-consistent shapes.
    B, S = 2, 8                       # batch, sequence length
    D, H = 32, 4                      # input_dim/output_dim, num_heads
    F = 64                            # feedforward_dim
    L = 2                             # num_layers
    V = 50                            # vocab_size
    dh = max(D // H, 1)               # per-head q/k/v dim (module default)

    key = jax.random.PRNGKey(0)
    k_tok, k_emb, k_par = jax.random.split(key, 3)

    tokens = jax.random.randint(k_tok, (B, S), 0, V, dtype=jnp.int32)
    embedding = jax.random.normal(k_emb, (V, D), jnp.float32)
    stacked_params = init_stacked_params(k_par, L, D, H, dh, F)

    out = transformer_encoder(tokens, embedding, stacked_params, H, dh)
    out = jax.block_until_ready(out)
    assert out.shape == (B, S, D)
    assert bool(jnp.all(jnp.isfinite(out)))
    print("KERNEL_OK")
</pallas_src>

<mosaic_0001>
module attributes {stable_mosaic.version = 11 : i64} {
  func.func @encoder_stack_kernel(%arg0: i32, %arg1: i32, %arg2: memref<1x8x32xf32, #tpu.memory_space<vmem>>, %arg3: memref<1x32x96xbf16, #tpu.memory_space<vmem>>, %arg4: memref<1x1x96xf32, #tpu.memory_space<vmem>>, %arg5: memref<1x32x32xbf16, #tpu.memory_space<vmem>>, %arg6: memref<1x1x32xf32, #tpu.memory_space<vmem>>, %arg7: memref<1x1x32xf32, #tpu.memory_space<vmem>>, %arg8: memref<1x1x32xf32, #tpu.memory_space<vmem>>, %arg9: memref<1x32x64xbf16, #tpu.memory_space<vmem>>, %arg10: memref<1x1x64xf32, #tpu.memory_space<vmem>>, %arg11: memref<1x64x32xbf16, #tpu.memory_space<vmem>>, %arg12: memref<1x1x32xf32, #tpu.memory_space<vmem>>, %arg13: memref<1x1x32xf32, #tpu.memory_space<vmem>>, %arg14: memref<1x1x32xf32, #tpu.memory_space<vmem>>, %arg15: memref<1x8x32xf32, #tpu.memory_space<vmem>>, %arg16: memref<1x8x32xf32, #tpu.memory_space<vmem>>) attributes {dimension_semantics = [#tpu.dimension_semantics<parallel>, #tpu.dimension_semantics<arbitrary>], iteration_bounds = array<i64: 2, 2>, scalar_prefetch = 0 : i64, scratch_operands = 1 : i64, tpu.core_type = #tpu.core_type<tc>, window_params = [{transform_indices = @transform_0, window_bounds = array<i64: 1, 8, 32>}, {transform_indices = @transform_1, window_bounds = array<i64: 1, 32, 96>}, {transform_indices = @transform_2, window_bounds = array<i64: 1, 1, 96>}, {transform_indices = @transform_3, window_bounds = array<i64: 1, 32, 32>}, {transform_indices = @transform_4, window_bounds = array<i64: 1, 1, 32>}, {transform_indices = @transform_5, window_bounds = array<i64: 1, 1, 32>}, {transform_indices = @transform_6, window_bounds = array<i64: 1, 1, 32>}, {transform_indices = @transform_7, window_bounds = array<i64: 1, 32, 64>}, {transform_indices = @transform_8, window_bounds = array<i64: 1, 1, 64>}, {transform_indices = @transform_9, window_bounds = array<i64: 1, 64, 32>}, {transform_indices = @transform_10, window_bounds = array<i64: 1, 1, 32>}, {transform_indices = @transform_11, window_bounds = array<i64: 1, 1, 32>}, {transform_indices = @transform_12, window_bounds = array<i64: 1, 1, 32>}, {transform_indices = @transform_13, window_bounds = array<i64: 1, 8, 32>}]} {
    %c0_i32 = arith.constant 0 : i32
    %0 = arith.cmpi eq, %arg1, %c0_i32 : i32
    %1 = arith.extui %0 : i1 to i32
    %c0_i32_0 = arith.constant 0 : i32
    %2 = arith.cmpi ne, %1, %c0_i32_0 : i32
    scf.if %2 {
      %c0_74 = arith.constant 0 : index
      %c0_75 = arith.constant 0 : index
      %c0_76 = arith.constant 0 : index
      %184 = vector.load %arg2[%c0_74, %c0_75, %c0_76] : memref<1x8x32xf32, #tpu.memory_space<vmem>>, vector<1x8x32xf32>
      %c0_77 = arith.constant 0 : index
      %c0_78 = arith.constant 0 : index
      %c0_79 = arith.constant 0 : index
      %185 = vector.load %arg16[%c0_77, %c0_78, %c0_79] : memref<1x8x32xf32, #tpu.memory_space<vmem>>, vector<1x8x32xf32>
      tpu.vector_store %arg16[%c0_77, %c0_78, %c0_79], %184 {strides = array<i32>} : memref<1x8x32xf32, #tpu.memory_space<vmem>>, vector<1x8x32xf32>,
    } else {
    }
    %c0 = arith.constant 0 : index
    %c0_1 = arith.constant 0 : index
    %c0_2 = arith.constant 0 : index
    %3 = vector.load %arg16[%c0, %c0_1, %c0_2] : memref<1x8x32xf32, #tpu.memory_space<vmem>>, vector<1x8x32xf32>
    %4 = vector.shape_cast %3 : vector<1x8x32xf32> to vector<8x32xf32>
    %5 = arith.truncf %4 : vector<8x32xf32> to vector<8x32xbf16>
    %c0_3 = arith.constant 0 : index
    %c0_4 = arith.constant 0 : index
    %c0_5 = arith.constant 0 : index
    %6 = vector.load %arg3[%c0_3, %c0_4, %c0_5] : memref<1x32x96xbf16, #tpu.memory_space<vmem>>, vector<1x32x96xbf16>
    %7 = vector.shape_cast %6 : vector<1x32x96xbf16> to vector<32x96xbf16>
    %cst = arith.constant dense<0.000000e+00> : vector<8x96xf32>
    %8 = tpu.matmul %5, %7, %cst {dimension_numbers = #tpu.dot_dimension_numbers<[1], [0], [0], [1], [0, 0, 1, 1], [], []>} : vector<8x32xbf16>, vector<32x96xbf16>, vector<8x96xf32> -> vector<8x96xf32>
    %c0_6 = arith.constant 0 : index
    %c0_7 = arith.constant 0 : index
    %c0_8 = arith.constant 0 : index
    %9 = vector.load %arg4[%c0_6, %c0_7, %c0_8] : memref<1x1x96xf32, #tpu.memory_space<vmem>>, vector<1x1x96xf32>
    %10 = vector.shape_cast %9 : vector<1x1x96xf32> to vector<1x96xf32>
    %11 = vector.broadcast %10 : vector<1x96xf32> to vector<8x96xf32>
    %12 = arith.addf %8, %11 : vector<8x96xf32>
    %13 = vector.extract_strided_slice %12 {offsets = [0, 0], sizes = [8, 32], strides = [1, 1]} : vector<8x96xf32> to vector<8x32xf32>
    %cst_9 = arith.constant 0.353553385 : f32
    %14 = vector.broadcast %cst_9 : f32 to vector<8x32xf32>
    %15 = arith.mulf %13, %14 : vector<8x32xf32>
    %16 = vector.shape_cast %15 : vector<8x32xf32> to vector<1x8x32xf32>
    %17 = vector.extract_strided_slice %12 {offsets = [0, 32], sizes = [8, 32], strides = [1, 1]} : vector<8x96xf32> to vector<8x32xf32>
    %18 = vector.shape_cast %17 : vector<8x32xf32> to vector<1x8x32xf32>
    %19 = vector.extract_strided_slice %12 {offsets = [0, 64], sizes = [8, 32], strides = [1, 1]} : vector<8x96xf32> to vector<8x32xf32>
    %20 = vector.shape_cast %19 : vector<8x32xf32> to vector<1x8x32xf32>
    %21 = vector.extract_strided_slice %16 {offsets = [0, 0, 0], sizes = [1, 8, 8], strides = [1, 1, 1]} : vector<1x8x32xf32> to vector<1x8x8xf32>
    %22 = arith.truncf %21 : vector<1x8x8xf32> to vector<1x8x8xbf16>
    %23 = vector.extract_strided_slice %18 {offsets = [0, 0, 0], sizes = [1, 8, 8], strides = [1, 1, 1]} : vector<1x8x32xf32> to vector<1x8x8xf32>
    %24 = arith.truncf %23 : vector<1x8x8xf32> to vector<1x8x8xbf16>
    %25 = vector.extract_strided_slice %20 {offsets = [0, 0, 0], sizes = [1, 8, 8], strides = [1, 1, 1]} : vector<1x8x32xf32> to vector<1x8x8xf32>
    %26 = arith.truncf %25 : vector<1x8x8xf32> to vector<1x8x8xbf16>
    "tpu.trace_start"() <{level = 10 : i32, message = "bqe,bke->bqk"}> : () -> ()
    %cst_10 = arith.constant dense<0.000000e+00> : vector<1x8x8xf32>
    %27 = tpu.matmul %22, %24, %cst_10 {dimension_numbers = #tpu.dot_dimension_numbers<[2], [2], [1], [1], [0, 0, 0, 1, 1, 1], [0], [0]>} : vector<1x8x8xbf16>, vector<1x8x8xbf16>, vector<1x8x8xf32> -> vector<1x8x8xf32>
    "tpu.trace_stop"() : () -> ()
    %cst_11 = arith.constant dense<0xFF800000> : vector<1x8xf32>
    %28 = vector.multi_reduction <maximumf>, %27, %cst_11 [2] : vector<1x8x8xf32> to vector<1x8xf32>
    %29 = vector.shape_cast %28 : vector<1x8xf32> to vector<1x8x1xf32>
    %30 = vector.broadcast %29 : vector<1x8x1xf32> to vector<1x8x8xf32>
    %31 = arith.subf %27, %30 : vector<1x8x8xf32>
    %32 = math.exp %31 : vector<1x8x8xf32>
    %cst_12 = arith.constant dense<0.000000e+00> : vector<1x8xf32>
    %33 = vector.multi_reduction <add>, %32, %cst_12 [2] : vector<1x8x8xf32> to vector<1x8xf32>
    %34 = vector.shape_cast %33 : vector<1x8xf32> to vector<1x8x1xf32>
    %35 = tpu.reciprocal %34 {approx = true} : vector<1x8x1xf32> -> vector<1x8x1xf32>
    %36 = vector.broadcast %35 : vector<1x8x1xf32> to vector<1x8x8xf32>
    %37 = arith.mulf %32, %36 : vector<1x8x8xf32>
    %38 = arith.truncf %37 : vector<1x8x8xf32> to vector<1x8x8xbf16>
    "tpu.trace_start"() <{level = 10 : i32, message = "bqk,bke->bqe"}> : () -> ()
    %cst_13 = arith.constant dense<0.000000e+00> : vector<1x8x8xf32>
    %39 = tpu.matmul %38, %26, %cst_13 {dimension_numbers = #tpu.dot_dimension_numbers<[2], [1], [1], [2], [0, 0, 0, 1, 1, 2], [0], [0]>} : vector<1x8x8xbf16>, vector<1x8x8xbf16>, vector<1x8x8xf32> -> vector<1x8x8xf32>
    "tpu.trace_stop"() : () -> ()
    %40 = vector.extract_strided_slice %16 {offsets = [0, 0, 8], sizes = [1, 8, 8], strides = [1, 1, 1]} : vector<1x8x32xf32> to vector<1x8x8xf32>
    %41 = arith.truncf %40 : vector<1x8x8xf32> to vector<1x8x8xbf16>
    %42 = vector.extract_strided_slice %18 {offsets = [0, 0, 8], sizes = [1, 8, 8], strides = [1, 1, 1]} : vector<1x8x32xf32> to vector<1x8x8xf32>
    %43 = arith.truncf %42 : vector<1x8x8xf32> to vector<1x8x8xbf16>
    %44 = vector.extract_strided_slice %20 {offsets = [0, 0, 8], sizes = [1, 8, 8], strides = [1, 1, 1]} : vector<1x8x32xf32> to vector<1x8x8xf32>
    %45 = arith.truncf %44 : vector<1x8x8xf32> to vector<1x8x8xbf16>
    "tpu.trace_start"() <{level = 10 : i32, message = "bqe,bke->bqk"}> : () -> ()
    %cst_14 = arith.constant dense<0.000000e+00> : vector<1x8x8xf32>
    %46 = tpu.matmul %41, %43, %cst_14 {dimension_numbers = #tpu.dot_dimension_numbers<[2], [2], [1], [1], [0, 0, 0, 1, 1, 1], [0], [0]>} : vector<1x8x8xbf16>, vector<1x8x8xbf16>, vector<1x8x8xf32> -> vector<1x8x8xf32>
    "tpu.trace_stop"() : () -> ()
    %cst_15 = arith.constant dense<0xFF800000> : vector<1x8xf32>
    %47 = vector.multi_reduction <maximumf>, %46, %cst_15 [2] : vector<1x8x8xf32> to vector<1x8xf32>
    %48 = vector.shape_cast %47 : vector<1x8xf32> to vector<1x8x1xf32>
    %49 = vector.broadcast %48 : vector<1x8x1xf32> to vector<1x8x8xf32>
    %50 = arith.subf %46, %49 : vector<1x8x8xf32>
    %51 = math.exp %50 : vector<1x8x8xf32>
    %cst_16 = arith.constant dense<0.000000e+00> : vector<1x8xf32>
    %52 = vector.multi_reduction <add>, %51, %cst_16 [2] : vector<1x8x8xf32> to vector<1x8xf32>
    %53 = vector.shape_cast %52 : vector<1x8xf32> to vector<1x8x1xf32>
    %54 = tpu.reciprocal %53 {approx = true} : vector<1x8x1xf32> -> vector<1x8x1xf32>
    %55 = vector.broadcast %54 : vector<1x8x1xf32> to vector<1x8x8xf32>
    %56 = arith.mulf %51, %55 : vector<1x8x8xf32>
    %57 = arith.truncf %56 : vector<1x8x8xf32> to vector<1x8x8xbf16>
    "tpu.trace_start"() <{level = 10 : i32, message = "bqk,bke->bqe"}> : () -> ()
    %cst_17 = arith.constant dense<0.000000e+00> : vector<1x8x8xf32>
    %58 = tpu.matmul %57, %45, %cst_17 {dimension_numbers = #tpu.dot_dimension_numbers<[2], [1], [1], [2], [0, 0, 0, 1, 1, 2], [0], [0]>} : vector<1x8x8xbf16>, vector<1x8x8xbf16>, vector<1x8x8xf32> -> vector<1x8x8xf32>
    "tpu.trace_stop"() : () -> ()
    %59 = vector.extract_strided_slice %16 {offsets = [0, 0, 16], sizes = [1, 8, 8], strides = [1, 1, 1]} : vector<1x8x32xf32> to vector<1x8x8xf32>
    %60 = arith.truncf %59 : vector<1x8x8xf32> to vector<1x8x8xbf16>
    %61 = vector.extract_strided_slice %18 {offsets = [0, 0, 16], sizes = [1, 8, 8], strides = [1, 1, 1]} : vector<1x8x32xf32> to vector<1x8x8xf32>
    %62 = arith.truncf %61 : vector<1x8x8xf32> to vector<1x8x8xbf16>
    %63 = vector.extract_strided_slice %20 {offsets = [0, 0, 16], sizes = [1, 8, 8], strides = [1, 1, 1]} : vector<1x8x32xf32> to vector<1x8x8xf32>
    %64 = arith.truncf %63 : vector<1x8x8xf32> to vector<1x8x8xbf16>
    "tpu.trace_start"() <{level = 10 : i32, message = "bqe,bke->bqk"}> : () -> ()
    %cst_18 = arith.constant dense<0.000000e+00> : vector<1x8x8xf32>
    %65 = tpu.matmul %60, %62, %cst_18 {dimension_numbers = #tpu.dot_dimension_numbers<[2], [2], [1], [1], [0, 0, 0, 1, 1, 1], [0], [0]>} : vector<1x8x8xbf16>, vector<1x8x8xbf16>, vector<1x8x8xf32> -> vector<1x8x8xf32>
    "tpu.trace_stop"() : () -> ()
    %cst_19 = arith.constant dense<0xFF800000> : vector<1x8xf32>
    %66 = vector.multi_reduction <maximumf>, %65, %cst_19 [2] : vector<1x8x8xf32> to vector<1x8xf32>
    %67 = vector.shape_cast %66 : vector<1x8xf32> to vector<1x8x1xf32>
    %68 = vector.broadcast %67 : vector<1x8x1xf32> to vector<1x8x8xf32>
    %69 = arith.subf %65, %68 : vector<1x8x8xf32>
    %70 = math.exp %69 : vector<1x8x8xf32>
    %cst_20 = arith.constant dense<0.000000e+00> : vector<1x8xf32>
    %71 = vector.multi_reduction <add>, %70, %cst_20 [2] : vector<1x8x8xf32> to vector<1x8xf32>
    %72 = vector.shape_cast %71 : vector<1x8xf32> to vector<1x8x1xf32>
    %73 = tpu.reciprocal %72 {approx = true} : vector<1x8x1xf32> -> vector<1x8x1xf32>
    %74 = vector.broadcast %73 : vector<1x8x1xf32> to vector<1x8x8xf32>
    %75 = arith.mulf %70, %74 : vector<1x8x8xf32>
    %76 = arith.truncf %75 : vector<1x8x8xf32> to vector<1x8x8xbf16>
    "tpu.trace_start"() <{level = 10 : i32, message = "bqk,bke->bqe"}> : () -> ()
    %cst_21 = arith.constant dense<0.000000e+00> : vector<1x8x8xf32>
    %77 = tpu.matmul %76, %64, %cst_21 {dimension_numbers = #tpu.dot_dimension_numbers<[2], [1], [1], [2], [0, 0, 0, 1, 1, 2], [0], [0]>} : vector<1x8x8xbf16>, vector<1x8x8xbf16>, vector<1x8x8xf32> -> vector<1x8x8xf32>
    "tpu.trace_stop"() : () -> ()
    %78 = vector.extract_strided_slice %16 {offsets = [0, 0, 24], sizes = [1, 8, 8], strides = [1, 1, 1]} : vector<1x8x32xf32> to vector<1x8x8xf32>
    %79 = arith.truncf %78 : vector<1x8x8xf32> to vector<1x8x8xbf16>
    %80 = vector.extract_strided_slice %18 {offsets = [0, 0, 24], sizes = [1, 8, 8], strides = [1, 1, 1]} : vector<1x8x32xf32> to vector<1x8x8xf32>
    %81 = arith.truncf %80 : vector<1x8x8xf32> to vector<1x8x8xbf16>
    %82 = vector.extract_strided_slice %20 {offsets = [0, 0, 24], sizes = [1, 8, 8], strides = [1, 1, 1]} : vector<1x8x32xf32> to vector<1x8x8xf32>
    %83 = arith.truncf %82 : vector<1x8x8xf32> to vector<1x8x8xbf16>
    "tpu.trace_start"() <{level = 10 : i32, message = "bqe,bke->bqk"}> : () -> ()
    %cst_22 = arith.constant dense<0.000000e+00> : vector<1x8x8xf32>
    %84 = tpu.matmul %79, %81, %cst_22 {dimension_numbers = #tpu.dot_dimension_numbers<[2], [2], [1], [1], [0, 0, 0, 1, 1, 1], [0], [0]>} : vector<1x8x8xbf16>, vector<1x8x8xbf16>, vector<1x8x8xf32> -> vector<1x8x8xf32>
    "tpu.trace_stop"() : () -> ()
    %cst_23 = arith.constant dense<0xFF800000> : vector<1x8xf32>
    %85 = vector.multi_reduction <maximumf>, %84, %cst_23 [2] : vector<1x8x8xf32> to vector<1x8xf32>
    %86 = vector.shape_cast %85 : vector<1x8xf32> to vector<1x8x1xf32>
    %87 = vector.broadcast %86 : vector<1x8x1xf32> to vector<1x8x8xf32>
    %88 = arith.subf %84, %87 : vector<1x8x8xf32>
    %89 = math.exp %88 : vector<1x8x8xf32>
    %cst_24 = arith.constant dense<0.000000e+00> : vector<1x8xf32>
    %90 = vector.multi_reduction <add>, %89, %cst_24 [2] : vector<1x8x8xf32> to vector<1x8xf32>
    %91 = vector.shape_cast %90 : vector<1x8xf32> to vector<1x8x1xf32>
    %92 = tpu.reciprocal %91 {approx = true} : vector<1x8x1xf32> -> vector<1x8x1xf32>
    %93 = vector.broadcast %92 : vector<1x8x1xf32> to vector<1x8x8xf32>
    %94 = arith.mulf %89, %93 : vector<1x8x8xf32>
    %95 = arith.truncf %94 : vector<1x8x8xf32> to vector<1x8x8xbf16>
    "tpu.trace_start"() <{level = 10 : i32, message = "bqk,bke->bqe"}> : () -> ()
    %cst_25 = arith.constant dense<0.000000e+00> : vector<1x8x8xf32>
    %96 = tpu.matmul %95, %83, %cst_25 {dimension_numbers = #tpu.dot_dimension_numbers<[2], [1], [1], [2], [0, 0, 0, 1, 1, 2], [0], [0]>} : vector<1x8x8xbf16>, vector<1x8x8xbf16>, vector<1x8x8xf32> -> vector<1x8x8xf32>
    "tpu.trace_stop"() : () -> ()
    %97 = tpu.concatenate %39, %58, %77, %96 in 2 : vector<1x8x8xf32>, vector<1x8x8xf32>, vector<1x8x8xf32>, vector<1x8x8xf32> -> vector<1x8x32xf32>
    %98 = vector.shape_cast %97 : vector<1x8x32xf32> to vector<8x32xf32>
    %99 = arith.truncf %98 : vector<8x32xf32> to vector<8x32xbf16>
    %c0_26 = arith.constant 0 : index
    %c0_27 = arith.constant 0 : index
    %c0_28 = arith.constant 0 : index
    %100 = vector.load %arg5[%c0_26, %c0_27, %c0_28] : memref<1x32x32xbf16, #tpu.memory_space<vmem>>, vector<1x32x32xbf16>
    %101 = vector.shape_cast %100 : vector<1x32x32xbf16> to vector<32x32xbf16>
    %cst_29 = arith.constant dense<0.000000e+00> : vector<8x32xf32>
    %102 = tpu.matmul %99, %101, %cst_29 {dimension_numbers = #tpu.dot_dimension_numbers<[1], [0], [0], [1], [0, 0, 1, 1], [], []>} : vector<8x32xbf16>, vector<32x32xbf16>, vector<8x32xf32> -> vector<8x32xf32>
    %c0_30 = arith.constant 0 : index
    %c0_31 = arith.constant 0 : index
    %c0_32 = arith.constant 0 : index
    %103 = vector.load %arg6[%c0_30, %c0_31, %c0_32] : memref<1x1x32xf32, #tpu.memory_space<vmem>>, vector<1x1x32xf32>
    %104 = vector.shape_cast %103 : vector<1x1x32xf32> to vector<1x32xf32>
    %105 = vector.broadcast %104 : vector<1x32xf32> to vector<8x32xf32>
    %106 = arith.addf %102, %105 : vector<8x32xf32>
    %107 = arith.addf %4, %106 : vector<8x32xf32>
    %c0_33 = arith.constant 0 : index
    %c0_34 = arith.constant 0 : index
    %c0_35 = arith.constant 0 : index
    %108 = vector.load %arg7[%c0_33, %c0_34, %c0_35] : memref<1x1x32xf32, #tpu.memory_space<vmem>>, vector<1x1x32xf32>
    %109 = vector.shape_cast %108 : vector<1x1x32xf32> to vector<1x32xf32>
    %c0_36 = arith.constant 0 : index
    %c0_37 = arith.constant 0 : index
    %c0_38 = arith.constant 0 : index
    %110 = vector.load %arg8[%c0_36, %c0_37, %c0_38] : memref<1x1x32xf32, #tpu.memory_space<vmem>>, vector<1x1x32xf32>
    %111 = vector.shape_cast %110 : vector<1x1x32xf32> to vector<1x32xf32>
    %cst_39 = arith.constant dense<0.000000e+00> : vector<8xf32>
    %112 = vector.multi_reduction <add>, %107, %cst_39 [1] : vector<8x32xf32> to vector<8xf32>
    %113 = vector.shape_cast %112 : vector<8xf32> to vector<8x1xf32>
    %cst_40 = arith.constant 3.200000e+01 : f32
    %114 = vector.broadcast %cst_40 : f32 to vector<8x1xf32>
    %115 = arith.divf %113, %114 : vector<8x1xf32>
    %116 = vector.broadcast %115 : vector<8x1xf32> to vector<8x32xf32>
    %117 = arith.subf %107, %116 : vector<8x32xf32>
    %118 = arith.mulf %117, %117 : vector<8x32xf32>
    %cst_41 = arith.constant dense<0.000000e+00> : vector<8xf32>
    %119 = vector.multi_reduction <add>, %118, %cst_41 [1] : vector<8x32xf32> to vector<8xf32>
    %120 = vector.shape_cast %119 : vector<8xf32> to vector<8x1xf32>
    %cst_42 = arith.constant 3.200000e+01 : f32
    %121 = vector.broadcast %cst_42 : f32 to vector<8x1xf32>
    %122 = arith.divf %120, %121 : vector<8x1xf32>
    %123 = vector.broadcast %115 : vector<8x1xf32> to vector<8x32xf32>
    %124 = arith.subf %107, %123 : vector<8x32xf32>
    %cst_43 = arith.constant 9.99999974E-6 : f32
    %125 = vector.broadcast %cst_43 : f32 to vector<8x1xf32>
    %126 = arith.addf %122, %125 : vector<8x1xf32>
    %127 = math.rsqrt %126 : vector<8x1xf32>
    %128 = vector.broadcast %127 : vector<8x1xf32> to vector<8x32xf32>
    %129 = arith.mulf %124, %128 : vector<8x32xf32>
    %130 = vector.broadcast %109 : vector<1x32xf32> to vector<8x32xf32>
    %131 = arith.mulf %129, %130 : vector<8x32xf32>
    %132 = vector.broadcast %111 : vector<1x32xf32> to vector<8x32xf32>
    %133 = arith.addf %131, %132 : vector<8x32xf32>
    %134 = arith.truncf %133 : vector<8x32xf32> to vector<8x32xbf16>
    %c0_44 = arith.constant 0 : index
    %c0_45 = arith.constant 0 : index
    %c0_46 = arith.constant 0 : index
    %135 = vector.load %arg9[%c0_44, %c0_45, %c0_46] : memref<1x32x64xbf16, #tpu.memory_space<vmem>>, vector<1x32x64xbf16>
    %136 = vector.shape_cast %135 : vector<1x32x64xbf16> to vector<32x64xbf16>
    %cst_47 = arith.constant dense<0.000000e+00> : vector<8x64xf32>
    %137 = tpu.matmul %134, %136, %cst_47 {dimension_numbers = #tpu.dot_dimension_numbers<[1], [0], [0], [1], [0, 0, 1, 1], [], []>} : vector<8x32xbf16>, vector<32x64xbf16>, vector<8x64xf32> -> vector<8x64xf32>
    %c0_48 = arith.constant 0 : index
    %c0_49 = arith.constant 0 : index
    %c0_50 = arith.constant 0 : index
    %138 = vector.load %arg10[%c0_48, %c0_49, %c0_50] : memref<1x1x64xf32, #tpu.memory_space<vmem>>, vector<1x1x64xf32>
    %139 = vector.shape_cast %138 : vector<1x1x64xf32> to vector<1x64xf32>
    %140 = vector.broadcast %139 : vector<1x64xf32> to vector<8x64xf32>
    %141 = arith.addf %137, %140 : vector<8x64xf32>
    %cst_51 = arith.constant 0.000000e+00 : f32
    %142 = vector.broadcast %cst_51 : f32 to vector<8x64xf32>
    %143 = arith.maximumf %141, %142 : vector<8x64xf32>
    %144 = arith.truncf %143 : vector<8x64xf32> to vector<8x64xbf16>
    %c0_52 = arith.constant 0 : index
    %c0_53 = arith.constant 0 : index
    %c0_54 = arith.constant 0 : index
    %145 = vector.load %arg11[%c0_52, %c0_53, %c0_54] : memref<1x64x32xbf16, #tpu.memory_space<vmem>>, vector<1x64x32xbf16>
    %146 = vector.shape_cast %145 : vector<1x64x32xbf16> to vector<64x32xbf16>
    %cst_55 = arith.constant dense<0.000000e+00> : vector<8x32xf32>
    %147 = tpu.matmul %144, %146, %cst_55 {dimension_numbers = #tpu.dot_dimension_numbers<[1], [0], [0], [1], [0, 0, 1, 1], [], []>} : vector<8x64xbf16>, vector<64x32xbf16>, vector<8x32xf32> -> vector<8x32xf32>
    %c0_56 = arith.constant 0 : index
    %c0_57 = arith.constant 0 : index
    %c0_58 = arith.constant 0 : index
    %148 = vector.load %arg12[%c0_56, %c0_57, %c0_58] : memref<1x1x32xf32, #tpu.memory_space<vmem>>, vector<1x1x32xf32>
    %149 = vector.shape_cast %148 : vector<1x1x32xf32> to vector<1x32xf32>
    %150 = vector.broadcast %149 : vector<1x32xf32> to vector<8x32xf32>
    %151 = arith.addf %147, %150 : vector<8x32xf32>
    %152 = arith.addf %133, %151 : vector<8x32xf32>
    %c0_59 = arith.constant 0 : index
    %c0_60 = arith.constant 0 : index
    %c0_61 = arith.constant 0 : index
    %153 = vector.load %arg13[%c0_59, %c0_60, %c0_61] : memref<1x1x32xf32, #tpu.memory_space<vmem>>, vector<1x1x32xf32>
    %154 = vector.shape_cast %153 : vector<1x1x32xf32> to vector<1x32xf32>
    %c0_62 = arith.constant 0 : index
    %c0_63 = arith.constant 0 : index
    %c0_64 = arith.constant 0 : index
    %155 = vector.load %arg14[%c0_62, %c0_63, %c0_64] : memref<1x1x32xf32, #tpu.memory_space<vmem>>, vector<1x1x32xf32>
    %156 = vector.shape_cast %155 : vector<1x1x32xf32> to vector<1x32xf32>
    %cst_65 = arith.constant dense<0.000000e+00> : vector<8xf32>
    %157 = vector.multi_reduction <add>, %152, %cst_65 [1] : vector<8x32xf32> to vector<8xf32>
    %158 = vector.shape_cast %157 : vector<8xf32> to vector<8x1xf32>
    %cst_66 = arith.constant 3.200000e+01 : f32
    %159 = vector.broadcast %cst_66 : f32 to vector<8x1xf32>
    %160 = arith.divf %158, %159 : vector<8x1xf32>
    %161 = vector.broadcast %160 : vector<8x1xf32> to vector<8x32xf32>
    %162 = arith.subf %152, %161 : vector<8x32xf32>
    %163 = arith.mulf %162, %162 : vector<8x32xf32>
    %cst_67 = arith.constant dense<0.000000e+00> : vector<8xf32>
    %164 = vector.multi_reduction <add>, %163, %cst_67 [1] : vector<8x32xf32> to vector<8xf32>
    %165 = vector.shape_cast %164 : vector<8xf32> to vector<8x1xf32>
    %cst_68 = arith.constant 3.200000e+01 : f32
    %166 = vector.broadcast %cst_68 : f32 to vector<8x1xf32>
    %167 = arith.divf %165, %166 : vector<8x1xf32>
    %168 = vector.broadcast %160 : vector<8x1xf32> to vector<8x32xf32>
    %169 = arith.subf %152, %168 : vector<8x32xf32>
    %cst_69 = arith.constant 9.99999974E-6 : f32
    %170 = vector.broadcast %cst_69 : f32 to vector<8x1xf32>
    %171 = arith.addf %167, %170 : vector<8x1xf32>
    %172 = math.rsqrt %171 : vector<8x1xf32>
    %173 = vector.broadcast %172 : vector<8x1xf32> to vector<8x32xf32>
    %174 = arith.mulf %169, %173 : vector<8x32xf32>
    %175 = vector.broadcast %154 : vector<1x32xf32> to vector<8x32xf32>
    %176 = arith.mulf %174, %175 : vector<8x32xf32>
    %177 = vector.broadcast %156 : vector<1x32xf32> to vector<8x32xf32>
    %178 = arith.addf %176, %177 : vector<8x32xf32>
    %179 = vector.shape_cast %178 : vector<8x32xf32> to vector<1x8x32xf32>
    %c0_70 = arith.constant 0 : index
    %c0_71 = arith.constant 0 : index
    %c0_72 = arith.constant 0 : index
    %180 = vector.load %arg16[%c0_70, %c0_71, %c0_72] : memref<1x8x32xf32, #tpu.memory_space<vmem>>, vector<1x8x32xf32>
    tpu.vector_store %arg16[%c0_70, %c0_71, %c0_72], %179 {strides = array<i32>} : memref<1x8x32xf32, #tpu.memory_space<vmem>>, vector<1x8x32xf32>,
    %c1_i32 = arith.constant 1 : i32
    %181 = arith.cmpi eq, %arg1, %c1_i32 : i32
    %182 = arith.extui %181 : i1 to i32
    %c0_i32_73 = arith.constant 0 : i32
    %183 = arith.cmpi ne, %182, %c0_i32_73 : i32
    scf.if %183 {
      %c0_74 = arith.constant 0 : index
      %c0_75 = arith.constant 0 : index
      %c0_76 = arith.constant 0 : index
      %184 = vector.load %arg16[%c0_74, %c0_75, %c0_76] : memref<1x8x32xf32, #tpu.memory_space<vmem>>, vector<1x8x32xf32>
      %c0_77 = arith.constant 0 : index
      %c0_78 = arith.constant 0 : index
      %c0_79 = arith.constant 0 : index
      %185 = vector.load %arg15[%c0_77, %c0_78, %c0_79] : memref<1x8x32xf32, #tpu.memory_space<vmem>>, vector<1x8x32xf32>
      tpu.vector_store %arg15[%c0_77, %c0_78, %c0_79], %184 {strides = array<i32>} : memref<1x8x32xf32, #tpu.memory_space<vmem>>, vector<1x8x32xf32>,
    } else {
    }
    return
  }
  func.func @transform_0(%arg0: i32, %arg1: i32) -> (i32, i32, i32) {
    %c0_i32 = arith.constant 0 : i32
    %c0_i32_0 = arith.constant 0 : i32
    %c0_i32_1 = arith.constant 0 : i32
    return %arg0, %c0_i32, %c0_i32_0 : i32, i32, i32
  }
  func.func @transform_1(%arg0: i32, %arg1: i32) -> (i32, i32, i32) {
    %c0_i32 = arith.constant 0 : i32
    %c0_i32_0 = arith.constant 0 : i32
    %c0_i32_1 = arith.constant 0 : i32
    return %arg1, %c0_i32, %c0_i32_0 : i32, i32, i32
  }
  func.func @transform_2(%arg0: i32, %arg1: i32) -> (i32, i32, i32) {
    %c0_i32 = arith.constant 0 : i32
    %c0_i32_0 = arith.constant 0 : i32
    %c0_i32_1 = arith.constant 0 : i32
    return %arg1, %c0_i32, %c0_i32_0 : i32, i32, i32
  }
  func.func @transform_3(%arg0: i32, %arg1: i32) -> (i32, i32, i32) {
    %c0_i32 = arith.constant 0 : i32
    %c0_i32_0 = arith.constant 0 : i32
    %c0_i32_1 = arith.constant 0 : i32
    return %arg1, %c0_i32, %c0_i32_0 : i32, i32, i32
  }
  func.func @transform_4(%arg0: i32, %arg1: i32) -> (i32, i32, i32) {
    %c0_i32 = arith.constant 0 : i32
    %c0_i32_0 = arith.constant 0 : i32
    %c0_i32_1 = arith.constant 0 : i32
    return %arg1, %c0_i32, %c0_i32_0 : i32, i32, i32
  }
  func.func @transform_5(%arg0: i32, %arg1: i32) -> (i32, i32, i32) {
    %c0_i32 = arith.constant 0 : i32
    %c0_i32_0 = arith.constant 0 : i32
    %c0_i32_1 = arith.constant 0 : i32
    return %arg1, %c0_i32, %c0_i32_0 : i32, i32, i32
  }
  func.func @transform_6(%arg0: i32, %arg1: i32) -> (i32, i32, i32) {
    %c0_i32 = arith.constant 0 : i32
    %c0_i32_0 = arith.constant 0 : i32
    %c0_i32_1 = arith.constant 0 : i32
    return %arg1, %c0_i32, %c0_i32_0 : i32, i32, i32
  }
  func.func @transform_7(%arg0: i32, %arg1: i32) -> (i32, i32, i32) {
    %c0_i32 = arith.constant 0 : i32
    %c0_i32_0 = arith.constant 0 : i32
    %c0_i32_1 = arith.constant 0 : i32
    return %arg1, %c0_i32, %c0_i32_0 : i32, i32, i32
  }
  func.func @transform_8(%arg0: i32, %arg1: i32) -> (i32, i32, i32) {
    %c0_i32 = arith.constant 0 : i32
    %c0_i32_0 = arith.constant 0 : i32
    %c0_i32_1 = arith.constant 0 : i32
    return %arg1, %c0_i32, %c0_i32_0 : i32, i32, i32
  }
  func.func @transform_9(%arg0: i32, %arg1: i32) -> (i32, i32, i32) {
    %c0_i32 = arith.constant 0 : i32
    %c0_i32_0 = arith.constant 0 : i32
    %c0_i32_1 = arith.constant 0 : i32
    return %arg1, %c0_i32, %c0_i32_0 : i32, i32, i32
  }
  func.func @transform_10(%arg0: i32, %arg1: i32) -> (i32, i32, i32) {
    %c0_i32 = arith.constant 0 : i32
    %c0_i32_0 = arith.constant 0 : i32
    %c0_i32_1 = arith.constant 0 : i32
    return %arg1, %c0_i32, %c0_i32_0 : i32, i32, i32
  }
  func.func @transform_11(%arg0: i32, %arg1: i32) -> (i32, i32, i32) {
    %c0_i32 = arith.constant 0 : i32
    %c0_i32_0 = arith.constant 0 : i32
    %c0_i32_1 = arith.constant 0 : i32
    return %arg1, %c0_i32, %c0_i32_0 : i32, i32, i32
  }
  func.func @transform_12(%arg0: i32, %arg1: i32) -> (i32, i32, i32) {
    %c0_i32 = arith.constant 0 : i32
    %c0_i32_0 = arith.constant 0 : i32
    %c0_i32_1 = arith.constant 0 : i32
    return %arg1, %c0_i32, %c0_i32_0 : i32, i32, i32
  }
  func.func @transform_13(%arg0: i32, %arg1: i32) -> (i32, i32, i32) {
    %c0_i32 = arith.constant 0 : i32
    %c0_i32_0 = arith.constant 0 : i32
    %c0_i32_1 = arith.constant 0 : i32
    return %arg0, %c0_i32, %c0_i32_0 : i32, i32, i32
  }
}

</mosaic_0001>

<bundles_post_ra>
// kernel: encoder_stack_pallas.1
= control target key start
LH: loop header
LB: loop body
LE: loop exit
PB: predicated region body
PF: predicated region fallthrough
CT: control target
= control target key end

     0   :  { %s2563_s0 = inlined_call_operand.hbm [shape: f32[2,8,32], index: 0, kind: input, shape index: {}]   ;;  %s2564_s1 = inlined_call_operand.vmem [shape: bf16[2,32,96], index: 1, kind: input, shape index: {}]   ;;  %s2565_s2 = inlined_call_operand.vmem [shape: f32[2,1,96], index: 2, kind: input, shape index: {}]   ;;  %s2566_s3 = inlined_call_operand.vmem [shape: bf16[2,32,32], index: 3, kind: input, shape index: {}]   ;;  %s2567_s4 = inlined_call_operand.vmem [shape: f32[2,1,32], index: 4, kind: input, shape index: {}]   ;;  %s2568_s5 = inlined_call_operand.vmem [shape: f32[2,1,32], index: 5, kind: input, shape index: {}]   ;;  %s2569_s6 = inlined_call_operand.vmem [shape: f32[2,1,32], index: 6, kind: input, shape index: {}]   ;;  %s2570_s7 = inlined_call_operand.vmem [shape: bf16[2,32,64], index: 7, kind: input, shape index: {}]   ;;  %s2571_s8 = inlined_call_operand.vmem [shape: f32[2,1,64], index: 8, kind: input, shape index: {}]   ;;  %s2572_s9 = inlined_call_operand.vmem [shape: bf16[2,64,32], index: 9, kind: input, shape index: {}]   ;;  %s2573_s10 = inlined_call_operand.vmem [shape: f32[2,1,32], index: 10, kind: input, shape index: {}]   ;;  %s2574_s11 = inlined_call_operand.vmem [shape: f32[2,1,32], index: 11, kind: input, shape index: {}]   ;;  %s2575_s12 = inlined_call_operand.vmem [shape: f32[2,1,32], index: 12, kind: input, shape index: {}]   ;;  %s2576_s13 = inlined_call_operand.hbm [shape: f32[2,8,32], index: 13, kind: output, shape index: {}]  }
   0x1   :  { %2590 = sst [smem:[#allocation22_spill]] %s2563_s0 }
   0x2   :  { %2591 = sst [smem:[#allocation23_spill]] %s2564_s1 }
   0x3   :  { %2592 = sst [smem:[#allocation24_spill]] %s2566_s3 }
   0x4   :  { %2593 = sst [smem:[#allocation25_spill]] %s2569_s6 }
   0x5   :  { %2594 = sst [smem:[#allocation26_spill]] %s2570_s7 }
   0x6   :  { %2595 = sst [smem:[#allocation27_spill]] %s2573_s10 }
   0x7   :  { %2596 = sst [smem:[#allocation28_spill]] %s2574_s11 }
   0x8   :  { %2597 = sst [smem:[#allocation29_spill]] %s2575_s12 }
   0x9   :  { %2598 = sst [smem:[#allocation30_spill]] %s2576_s13 }
   0xa   :  { %18 = vsyncpa [#allocation4], 0 }
   0xb   :  { %20 = vsyncpa [#allocation4 + $0x1], 0 }
   0xc   :  { %21 = vsyncpa [#allocation5], 0 }
   0xd   :  { %23 = vsyncpa [#allocation5 + $0x1], 0  ;;  %s2210_s25 = smov 0   ;;  %s2212_s26 = smov 0  }
   0xe   :  { %s2214_s27 = smov 0   ;;  %s2216_s28 = smov 0  }
   0xf   :  { %s2218_s29 = smov 0   ;;  %s2220_s30 = smov 0  }
  0x10   :  { %s2222_s14 = smov 0   ;;  %s2224_s15 = smov 0  }
  0x11 LB: > { %2599 = sst [smem:[#allocation9_spill]] %s2092_s25  ;;  %s1701_s16 = sadd.s32 4294967295, %s2120_s15   ;;  %s2120_s15 = sphi %s2224_s15, %s29_s15   ;;  %s2116_s14 = sphi %s2222_s14, %s2647_s14   ;;  %s2112_s30 = sphi %s2220_s30, %s2646_s30   ;;  %s2108_s29 = sphi %s2218_s29, %s2645_s29   ;;  %s2104_s28 = sphi %s2216_s28, %s2644_s28   ;;  %s2100_s27 = sphi %s2214_s27, %s2643_s27   ;;  %s2096_s26 = sphi %s2212_s26, %s2642_s26   ;;  %s2092_s25 = sphi %s2210_s25, %s2641_s25  }
  0x12   : > { %2600 = sst [smem:[#allocation10_spill]] %s2096_s26  ;;  %s1702_s17 = sadd.s32 4294967294, %s2120_s15  }
  0x13   : > { %2601 = sst [smem:[#allocation11_spill]] %s2100_s27  ;;  %s38_s18 = sadd.s32 1, %s2112_s30 }
  0x14   : > { %2602 = sst [smem:[#allocation12_spill]] %s2108_s29  ;;  %s41_s19 = sadd.s32 1, %s2116_s14 }
  0x15   : > { %2603 = sst [smem:[#allocation13_spill]] %s2112_s30  ;;  %p39_p0 = scmp.ge.s32.totalorder %s38_s18, 2 }
  0x16   : > { %2604 = sst [smem:[#allocation14_spill]] %s2116_s14  ;;  %s48_s20 = sadd.s32 1, %s2100_s27 }
  0x17   : > { %2605 = sst [smem:[#allocation15_spill]] %s2120_s15  ;;  %p55_p1 = scmp.ne.s32.totalorder %s2100_s27, %s2096_s26 }
  0x18   : > { %p56_p2 = scmp.eq.s32.totalorder %s2120_s15, 0  ;;  %s2649_s18 = smov (%p39_p0, %s38_s18), 0 }
  0x19   : > { %2606 = sst [smem:[#allocation16_spill]] %s2649_s18  ;;  %s2651_s19 = smov (!%p39_p0, %s41_s19), %s2116_s14 }
  0x1a   : > { %p2261_p3 = por %p56_p2, %p55_p1  ;;  %p61_p4 = scmp.ne.s32.totalorder %s2096_s26, %s2092_s25 }
  0x1b   : > { %p43_p5 = scmp.ge.s32.totalorder %s2651_s19, 2  ;;  %p62_p6 = scmp.eq.s32.totalorder %s1701_s16, 0 }
  0x1c   : > { %p397_p7 = scmp.eq.s32.totalorder %s1701_s16, 3  ;;  %p403_p8 = scmp.eq.s32.totalorder %s1702_s17, 3 }
  0x1d   : > { %s2653_s19 = smov (%p43_p5, %s2651_s19), 0  ;;  %p2269_p9 = por %p62_p6, %p61_p4 }
  0x1e   : > { %2608 = sst [smem:[#allocation17_spill]] %s2653_s19  ;;  %p2273_p10 = por %p397_p7, %p55_p1 }
  0x1f   : > { %s45_s24 = ssub.s32 %s2116_s14, %s2653_s19  ;;  %p2279_p11 = por %p403_p8, %p61_p4 }
  0x20   : > { %s2610_s23 = scalar_select %p2273_p10, 1, 0 }
  0x21   : > { %s2612_s18 = scalar_select %p2279_p11, 1, 0 }
  0x22   : > { %2611 = sst [smem:[#allocation18_spill]] %s2610_s23  ;;  %p46_p12 = scmp.eq.s32.totalorder %s45_s24, 0 }
  0x23   : > { %2613 = sst [smem:[#allocation19_spill]] %s2612_s18  ;;  %p1884_p13 = scmp.lt.s32.totalorder %s2120_s15, 4 }
  0x24   : > { %s423_s16 = sand.u32 1, %s2100_s27   ;;  %s1706_s25 = sshll.u32 %s2116_s14, 7 }
  0x25   : > { %s2286_s17 = scalar_select %p46_p12, %s2100_s27, %s48_s20  }
  0x26   : > { %s1705_s30 = sshll.u32 %s423_s16, 3  ;;  %s2615_s0 = sld [smem:[#allocation22_spill]] }
  0x27   : > { %2614 = sst [smem:[#allocation20_spill]] %s2286_s17  ;;  %s427_s11 = scalar_lea.vmem [#allocation3], %s1705_s30 }
  0x28   : > { %s434_s10 = sshll.u32 %s427_s11, 4  ;;  %p2294_p0 = pnand %p1884_p13, %p2261_p3  ;;  %s435_s10 = int_to_ptr.vmem [resolvable:$true] %s434_s10 }
  0x29   : > { %p1707_p1 = scmp.ge.s32.totalorder %s2120_s15, 1  ;;  %p519_p2 = scmp.lt.s32.totalorder %s2120_s15, 5 }
  0x2a   : > { %s424_s24 = scalar_lea.sflag [#allocation4], %s423_s16  ;;  %p1998_p4 = pneg %p2294_p0 }
  0x2b   : > { %s2009_s20 = scalar_lea.vmem %s435_s10, 128  ;;  %s2122_s13 = smov [#allocation3]  }
  0x2c   : > { %s432_s12 = scalar_lea.hbm %s2615_s0, %s1706_s25  ;;  %p2010_p5 = scmp.ne.s32.totalorder %s435_s10, %s2009_s20 }
  0x2d   : > { %s2014_s25 = sshll.u32 %s2122_s13, 4  ;;  %s2015_s25 = int_to_ptr.vmem [resolvable:$false] %s2014_s25 }
  0x2e   : > { %p2012_p6 = pnand %p2010_p5, %p1998_p4  ;;  %s2016_s11 = scalar_lea.vmem %s2015_s25, 256 }
  0x2f   : > { %p2017_p8 = scmp.lt.s32.totalorder %s435_s10, %s2015_s25  ;;  %p2018_p12 = scmp.lt.s32.totalorder %s2016_s11, %s2009_s20 }
  0x30   : > { %p2013_p7 = pneg %p2012_p6 }
  0x31   : > { %p2019_p3 = por %p2018_p12, %p2017_p8 }
  0x33   : > { %p2020_p13 = pnand %p2019_p3, %p2013_p7 }
  0x35   : > { %2023 = shalt.err (!%p2020_p13)
}
  0x36   : > { %1879 = dma.hbm_to_vmem [thread:$0]  (!%p2294_p0), %s432_s12, 128, %s435_s10, %s424_s24  }
  0x37   : > { %p520_p11 = pnand %p1707_p1, %p519_p2 }
  0x39   : > { %523 = sbr.rel (%p520_p11) target bundleno = 2537 (0x9e9), region = 72 }
  0x3e   : > { %s2309_s29 = sand.u32 1, %s2096_s26  }
  0x3f   : > { %2617 = sst [smem:[#allocation21_spill]] %s2309_s29  ;;  %s1708_s30 = sshll.u32 %s2309_s29, 3 }
  0x40   : > { %s526_s21 = scalar_lea.sflag [#allocation4], %s2309_s29  ;;  %s529_s16 = scalar_lea.vmem [#allocation3], %s1708_s30 }
  0x41   : > { %2083 = dma.done.wait (%p2269_p9), %s526_s21, 128  }
  0x42   : > { %2085 = vsyncadd (%p2269_p9), %s526_s21, 4294967168  ;;  %p616_p0 = scmp.lt.s32.totalorder %s2104_s28, 1  ;;  %s2618_s1 = sld [smem:[#allocation23_spill]] }
  0x43   : > { %s2619_s3 = sld [smem:[#allocation24_spill]]  ;;  %s2373_s11 = scalar_lea.vmem [#allocation6], %s1708_s30 }
  0x44   : > { %s2319_s10 = scalar_select %p616_p0, %s2104_s28, 1 }
  0x45   : > { %s2621_s7 = sld [smem:[#allocation26_spill]]  ;;  %p1718_p9 = scmp.ne.s32.totalorder %s2104_s28, 0 }
  0x46   : > { %s1754_s12 = sshll.u32 %s2319_s10, 4  ;;  %s2622_s15 = sld [smem:[#allocation27_spill]] }
  0x47   : > { %s2623_s29 = sld [smem:[#allocation28_spill]] }
  0x48   : > { %s620_s25 = scalar_lea.vmem %s2618_s1, %s1754_s12  ;;  %s645_s1 = scalar_lea.vmem %s2571_s8, %s2319_s10 }
  0x49   : > { %s2332_s0 = scalar_lea.vmem %s2619_s3, %s1754_s12  ;;  %s1757_s3 = sshll.u32 %s2319_s10, 5 }
  0x4a   : > { %s2359_s27 = scalar_lea.vmem %s2572_s9, %s1757_s3 }
  0x4b   : > { %s2349_s13 = scalar_lea.vmem %s2621_s7, %s1754_s12  ;;  %s2624_s7 = sld [smem:[#allocation29_spill]] }
  0x4c   : > { %s653_s23 = scalar_lea.vmem %s2622_s15, %s2319_s10 }
  0x4d   : > { %s656_s22 = scalar_lea.vmem %s2623_s29, %s2319_s10  ;;  %664 = sbr.rel (%p1718_p9) target bundleno = 84 (0x54), region = 80 }
  0x51   : > { %s659_s6 = scalar_lea.vmem %s2624_s7, %s2319_s10 }
  0x52   : > { %v665_v0 = vld [vmem:[%s529_s16] sm:$0xff]  ;;  %vm666_vm0 = vcmask 261120  }
  0x53   : > { %667 = vst.msk [vmem:[#allocation2] sm:$0xff] %vm666_vm0, %v665_v0 }
  0x54 PF: > { %v1966_v1 = vld [vmem:[%s620_s25 + $0x8] sm:$0xff]   ;;  %v2123_v2 = vmov 0.0   ;;  %v1967_v3 = vld [vmem:[%s620_s25] sm:$0xff]   ;;  %vm2124_vm1 = vmmov 0   ;;  %vm693_vm2 = vcmask 261120   ;;  %s2625_s15 = scalar_lea.vmem %s2565_s2, %s2319_s10  ;;  %s2125_s29 = smov 96  }
  0x55   : > { %1788 = vmatprep.subr.bf16.mxu0 %v2123_v2  ;;  %1796 = vmatprep.subr.bf16.mxu1 %v2123_v2  ;;  %v1719_v6 = vld [vmem:[%s2625_s15] ss:$0 sm:$0xff]  ;;  %s2126_s30 = smov 120   ;;  %s2127_s16 = smov 88   ;;  %vm743_vm3 = vcmask 64512   ;;  %vm807_vm4 = vcmask 1043456  }
  0x56   : > { %1789 = vmatpush3.bf16.msra.mxu0 %v1966_v1  ;;  %1792 = vmatprep.mubr.msk.bf16.mxu0 %vm2124_vm1, %v2123_v2  ;;  %s2128_s25 = smov 80   ;;  %s2129_s24 = smov 112   ;;  %vm1195_vm5 = vcmask 130048   ;;  %vm1197_vm6 = vcmask 195584   ;;  %vm1405_vm7 = vcmask 523264  }
  0x57   : > { %1790 = vmatprep.subr.bf16.mxu0 %v2123_v2  ;;  %1798 = vmatprep.mubr.msk.bf16.mxu1 %vm2124_vm1, %v2123_v2  ;;  %s2130_s21 = smov 72   ;;  %s2131_s14 = smov 104  }
  0x58   : > { %s2132_s17 = smov 56   ;;  %s2133_s26 = smov 64  }
  0x59   : > { %s2134_s18 = smov 40   ;;  %s2135_s19 = smov 48  }
  0x5a   : > { %v2380_v4 = vld [vmem:[#allocation2] sm:$0xff]  ;;  %1791 = vmatpush3.bf16.msra.mxu0 %v1967_v3  ;;  %s2136_s12 = smov 8   ;;  %s2137_s20 = smov 16  }
  0x5b   : > { %v669_v5 = vpack.c.bf16 %v2380_v4, %v2380_v4  ;;  %1802 = vmatprep.subr.bf16.mxu0 %v2123_v2  ;;  %s2138_s3 = smov 24   ;;  %s2626_s15 = scalar_lea.vmem %s2567_s4, %s2319_s10 }
  0x5c   : > { %p1749_p11 = scmp.ne.s32.totalorder %s2104_s28, 1 }
  0x5d   : > { %1793 = vmatmul.mubr.msk.bf16.vlgmr.msra.gmra.mxu0 %vm693_vm2, %v669_v5 }
  0x5e   : > { %1804 = vmatprep.mubr.msk.bf16.mxu0 %vm2124_vm1, %v2123_v2 }
 0x11d   : > { %v731_v7 = vpop.f32.mrf.mxu0 }
 0x11e   : > { %v732_v8 = vadd.f32 %v1719_v6, %v731_v7 }
 0x11f   : > { %v1794_v9 = vpop.f32.mrf.mxu0 }
 0x120   : > { %v737_v10 = vmul.f32 0.35355338, %v732_v8  ;;  %v2396_v11 = vpack.c.bf16 %v732_v8, %v732_v8 }
 0x121   : > { %v734_v12 = vpop.f32.mrf.mxu0 }
 0x122   : > { %v738_v13 = vpack.c.bf16 %v737_v10, %v737_v10  ;;  %741 = vrot.lane.b32.xlu0 %v2396_v11, %s2125_s29 }
 0x123   : > { %v1795_v14 = vpop.f32.mrf.mxu0 }
 0x124   : > { %852 = vrot.lane.b32.xlu1 %v738_v13, %s2126_s30  ;;  %s2627_s30 = scalar_lea.vmem %s2568_s5, %s2319_s10 }
 0x126   : > { %854 = vrot.lane.b32.xlu0 %v2396_v11, %s2127_s16 }
 0x128   : > { %964 = vrot.lane.b32.xlu1 %v2396_v11, %s2128_s25 }
 0x12a   : > { %962 = vrot.lane.b32.xlu0 %v738_v13, %s2129_s24  ;;  %s2628_s24 = sld [smem:[#allocation25_spill]] }
 0x12c   : > { %1074 = vrot.lane.b32.xlu1 %v2396_v11, %s2130_s21 }
 0x12e   : > { %1072 = vrot.lane.b32.xlu0 %v738_v13, %s2131_s14 }
 0x130   : > { %s2629_s21 = scalar_lea.vmem %s2628_s24, %s2319_s10 }
 0x194   : > { %v742_v15 = vpop.permute.xlu0 %741 }
 0x195   : > { %v748_v16 = vsel %vm743_vm3, %v742_v15, 0 }
 0x196   : > { %1797 = vmatpush3.bf16.xpose.msra.mxu1 %v748_v16  ;;  %v853_v18 = vpop.permute.xlu1 %852 }
 0x197   : > { %1808 = vmatprep.subr.bf16.mxu1 %v2123_v2 }
 0x198   : > { %v855_v17 = vpop.permute.xlu0 %854 }
 0x199   : > { %v860_v19 = vsel %vm743_vm3, %v855_v17, 0 }
 0x19a   : > { %v965_v20 = vpop.permute.xlu1 %964 }
 0x19b   : > { %v970_v21 = vsel %vm743_vm3, %v965_v20, 0 }
 0x19c   : > { %v963_v23 = vpop.permute.xlu0 %962 }
 0x19d   : > { %1799 = vmatmul.mubr.msk.bf16.vlgmr.msra.gmra.mxu1 %vm743_vm3, %v738_v13 }
 0x19e   : > { %1809 = vmatpush3.bf16.xpose.msra.mxu1 %v860_v19  ;;  %1810 = vmatprep.mubr.msk.bf16.mxu1 %vm2124_vm1, %v2123_v2  ;;  %v1075_v22 = vpop.permute.xlu1 %1074 }
 0x19f   : > { %1820 = vmatprep.subr.bf16.mxu1 %v2123_v2  ;;  %v1080_v24 = vsel %vm743_vm3, %v1075_v22, 0 }
 0x1a0   : > { %v1073_v25 = vpop.permute.xlu0 %1072 }
 0x1a5   : > { %1811 = vmatmul.mubr.msk.bf16.vlgmr.msra.gmra.mxu1 %vm743_vm3, %v853_v18 }
 0x1a6   : > { %1821 = vmatpush3.bf16.xpose.msra.mxu1 %v970_v21  ;;  %1822 = vmatprep.mubr.msk.bf16.mxu1 %vm2124_vm1, %v2123_v2 }
 0x1a7   : > { %1832 = vmatprep.subr.bf16.mxu1 %v2123_v2 }
 0x1ad   : > { %1823 = vmatmul.mubr.msk.bf16.vlgmr.msra.gmra.mxu1 %vm743_vm3, %v963_v23 }
 0x1ae   : > { %1833 = vmatpush3.bf16.xpose.msra.mxu1 %v1080_v24  ;;  %1834 = vmatprep.mubr.msk.bf16.mxu1 %vm2124_vm1, %v2123_v2 }
 0x1af   : > { %1844 = vmatprep.subr.bf16.mxu1 %v2123_v2 }
 0x1b5   : > { %1835 = vmatmul.mubr.msk.bf16.vlgmr.msra.gmra.mxu1 %vm743_vm3, %v1073_v25 }
 0x1b6   : > { %1848 = vmatprep.mubr.msk.bf16.mxu1 %vm2124_vm1, %v2123_v2 }
 0x25d   : > { %v784_v26 = vpop.f32.mrf.mxu1 }
 0x25e   : > { %v790_v27 = vsel %vm743_vm3, %v784_v26, -inf }
 0x25f   : > { %791 = vmax.xlane.f32.xlu1 %v790_v27  ;;  %v1800_v28 = vpop.f32.mrf.mxu1 }
 0x261   : > { %v787_v29 = vpop.f32.mrf.mxu1 }
 0x263   : > { %v1801_v30 = vpop.f32.mrf.mxu1 }
 0x265   : > { %v896_v31 = vpop.f32.mrf.mxu1 }
 0x266   : > { %v902_v32 = vsel %vm743_vm3, %v896_v31, -inf }
 0x267   : > { %903 = vmax.xlane.f32.xlu0 %v902_v32  ;;  %v1812_v33 = vpop.f32.mrf.mxu1 }
 0x269   : > { %v899_v34 = vpop.f32.mrf.mxu1 }
 0x26b   : > { %v1813_v35 = vpop.f32.mrf.mxu1 }
 0x26d   : > { %v1006_v36 = vpop.f32.mrf.mxu1 }
 0x26e   : > { %v1012_v37 = vsel %vm743_vm3, %v1006_v36, -inf }
 0x26f   : > { %1013 = vmax.xlane.f32.xlu0 %v1012_v37  ;;  %v1824_v38 = vpop.f32.mrf.mxu1  ;;  %v1969_v37 = vld [vmem:[%s2332_s0] sm:$0xff]  }
 0x271   : > { %v1009_v39 = vpop.f32.mrf.mxu1 }
 0x273   : > { %v1825_v40 = vpop.f32.mrf.mxu1 }
 0x275   : > { %v1116_v41 = vpop.f32.mrf.mxu1 }
 0x276   : > { %v1122_v42 = vsel %vm743_vm3, %v1116_v41, -inf }
 0x277   : > { %1123 = vmax.xlane.f32.xlu1 %v1122_v42  ;;  %v1836_v43 = vpop.f32.mrf.mxu1 }
 0x279   : > { %v1119_v44 = vpop.f32.mrf.mxu1 }
 0x27b   : > { %v1837_v45 = vpop.f32.mrf.mxu1 }
 0x2e8   : > { %v792_v46 = vpop.xlane.xlu1 %791 }
 0x2e9   : > { %v793_v47 = vsub.f32 %v784_v26, %v792_v46 }
 0x2eb   : > { %v794_v48 = vmul.f32 1.442695, %v793_v47 }
 0x2ed   : > { %1976 = vpow2.f32 %v794_v48 }
 0x2f0   : > { %v904_v49 = vpop.xlane.xlu0 %903 }
 0x2f1   : > { %v905_v50 = vsub.f32 %v896_v31, %v904_v49 }
 0x2f3   : > { %v906_v51 = vmul.f32 1.442695, %v905_v50 }
 0x2f5   : > { %1978 = vpow2.f32 %v906_v51 }
 0x2f8   : > { %v1014_v52 = vpop.xlane.xlu0 %1013 }
 0x2f9   : > { %v1015_v53 = vsub.f32 %v1006_v36, %v1014_v52  ;;  %v1968_v36 = vld [vmem:[%s2332_s0 + $0x8] sm:$0xff]  }
 0x2fa   : > { %v1977_v54 = vpop.eup %1976  ;;  %1845 = vmatpush3.bf16.msra.mxu1 %v1968_v36 }
 0x2fb   : > { %v1016_v55 = vmul.f32 1.442695, %v1015_v53  ;;  %v796_v56 = vsel %vm743_vm3, %v1977_v54, 0.0  ;;  %1846 = vmatprep.subr.bf16.mxu1 %v2123_v2  ;;  %v1731_v53 = vld [vmem:[%s2626_s15] ss:$0 sm:$0xff] }
 0x2fc   : > { %797 = vadd.xlane.f32.xlu0 %v796_v56 }
 0x2fd   : > { %1980 = vpow2.f32 %v1016_v55 }
 0x2fe   : > { %1847 = vmatpush3.bf16.msra.mxu1 %v1969_v37 }
 0x2ff   : > { %1860 = vmatprep.subr.bf16.mxu1 %v2123_v2 }
 0x300   : > { %v1124_v61 = vpop.xlane.xlu1 %1123 }
 0x301   : > { %v1125_v62 = vsub.f32 %v1116_v41, %v1124_v61 }
 0x302   : > { %v1979_v57 = vpop.eup %1978 }
 0x303   : > { %v908_v58 = vsel %vm743_vm3, %v1979_v57, 0.0  ;;  %v1126_v63 = vmul.f32 1.442695, %v1125_v62 }
 0x304   : > { %909 = vadd.xlane.f32.xlu1 %v908_v58 }
 0x305   : > { %1982 = vpow2.f32 %v1126_v63 }
 0x30a   : > { %v1981_v59 = vpop.eup %1980 }
 0x30b   : > { %v1018_v60 = vsel %vm743_vm3, %v1981_v59, 0.0 }
 0x30c   : > { %1019 = vadd.xlane.f32.xlu0 %v1018_v60 }
 0x312   : > { %v1983_v0 = vpop.eup %1982 }
 0x313   : > { %v1128_v1 = vsel %vm743_vm3, %v1983_v0, 0.0 }
 0x315   : > { %914 = vrot.lane.b32.xlu1 %v2396_v11, %s2132_s17 }
 0x322   : > { %802 = vrot.lane.b32.xlu0 %v2396_v11, %s2133_s26 }
 0x326   : > { %1134 = vrot.lane.b32.xlu0 %v2396_v11, %s2134_s18 }
 0x339   : > { %1129 = vadd.xlane.f32.xlu1 %v1128_v1 }
 0x34a   : > { %1024 = vrot.lane.b32.xlu1 %v2396_v11, %s2135_s19 }
 0x385   : > { %v798_v3 = vpop.xlane.xlu0 %797 }
 0x386   : > { %1984 = vrcp.f32 %v798_v3  ;;  %v1970_v3 = vld [vmem:[%s2349_s13 + $0x8] sm:$0xff]  }
 0x38d   : > { %v910_v5 = vpop.xlane.xlu1 %909 }
 0x38e   : > { %1986 = vrcp.f32 %v910_v5  ;;  %v1971_v5 = vld [vmem:[%s2349_s13] sm:$0xff]  }
 0x391   : > { %v915_v12 = vpop.permute.xlu1 %914 }
 0x392   : > { %v920_v15 = vsel %vm807_vm4, %v915_v12, 0  ;;  %v1735_v12 = vld [vmem:[%s2627_s30] ss:$0 sm:$0xff] }
 0x393   : > { %v1985_v6 = vpop.eup %1984 }
 0x394   : > { %v800_v8 = vmul.f32 %v1985_v6, %v1977_v54  ;;  %v1973_v6 = vld [vmem:[%s2359_s27 + $0x10] sm:$0xff]  }
 0x395   : > { %v1020_v7 = vpop.xlane.xlu0 %1019 }
 0x396   : > { %v801_v13 = vpack.c.bf16 %v800_v8, %v800_v8  ;;  %1988 = vrcp.f32 %v1020_v7 }
 0x399   : > { %v803_v9 = vpop.permute.xlu0 %802 }
 0x39a   : > { %v809_v10 = vsel %vm807_vm4, %v803_v9, 0 }
 0x39b   : > { %1803 = vmatpush3.bf16.msra.mxu0 %v809_v10  ;;  %v1987_v14 = vpop.eup %1986 }
 0x39c   : > { %1814 = vmatprep.subr.bf16.mxu0 %v2123_v2  ;;  %v912_v11 = vmul.f32 %v1987_v14, %v1979_v57  ;;  %v1736_v14 = vld [vmem:[%s2629_s21] ss:$0 sm:$0xff] }
 0x39d   : > { %v1135_v22 = vpop.permute.xlu0 %1134 }
 0x39e   : > { %1805 = vmatmul.mubr.msk.bf16.vlgmr.msra.gmra.mxu0 %vm743_vm3, %v801_v13  ;;  %v913_v16 = vpack.c.bf16 %v912_v11, %v912_v11  ;;  %v1140_v24 = vsel %vm807_vm4, %v1135_v22, 0 }
 0x39f   : > { %1815 = vmatpush3.bf16.msra.mxu0 %v920_v15  ;;  %1816 = vmatprep.mubr.msk.bf16.mxu0 %vm2124_vm1, %v2123_v2 }
 0x3a0   : > { %1826 = vmatprep.subr.bf16.mxu0 %v2123_v2 }
 0x3a3   : > { %v1989_v17 = vpop.eup %1988 }
 0x3a4   : > { %v1022_v19 = vmul.f32 %v1989_v17, %v1981_v59  ;;  %v1974_v17 = vld [vmem:[%s2359_s27 + $0x8] sm:$0xff]  }
 0x3a6   : > { %1817 = vmatmul.mubr.msk.bf16.vlgmr.msra.gmra.mxu0 %vm743_vm3, %v913_v16  ;;  %v1023_v23 = vpack.c.bf16 %v1022_v19, %v1022_v19  ;;  %v1737_v19 = vld [vmem:[%s645_s1] ss:$0 sm:$0xff] }
 0x3a7   : > { %1828 = vmatprep.mubr.msk.bf16.mxu0 %vm2124_vm1, %v2123_v2 }
 0x3c2   : > { %v1130_v18 = vpop.xlane.xlu1 %1129 }
 0x3c3   : > { %1990 = vrcp.f32 %v1130_v18  ;;  %v1975_v18 = vld [vmem:[%s2359_s27] sm:$0xff]  }
 0x3c6   : > { %v1025_v20 = vpop.permute.xlu1 %1024 }
 0x3c7   : > { %v1030_v21 = vsel %vm807_vm4, %v1025_v20, 0 }
 0x3c8   : > { %1827 = vmatpush3.bf16.msra.mxu0 %v1030_v21 }
 0x3c9   : > { %1838 = vmatprep.subr.bf16.mxu0 %v2123_v2 }
 0x3cb   : > { %1829 = vmatmul.mubr.msk.bf16.vlgmr.msra.gmra.mxu0 %vm743_vm3, %v1023_v23 }
 0x3cc   : > { %1839 = vmatpush3.bf16.msra.mxu0 %v1140_v24  ;;  %1840 = vmatprep.mubr.msk.bf16.mxu0 %vm2124_vm1, %v2123_v2 }
 0x3cd   : > { %1852 = vmatprep.subr.bf16.mxu0 %v2123_v2 }
 0x3d0   : > { %v1991_v25 = vpop.eup %1990 }
 0x3d1   : > { %v1132_v26 = vmul.f32 %v1991_v25, %v1983_v0 }
 0x3d3   : > { %v1133_v27 = vpack.c.bf16 %v1132_v26, %v1132_v26 }
 0x3d5   : > { %1841 = vmatmul.mubr.msk.bf16.vlgmr.msra.gmra.mxu0 %vm743_vm3, %v1133_v27 }
 0x3d6   : > { %1856 = vmatprep.mubr.msk.bf16.mxu0 %vm2124_vm1, %v2123_v2  ;;  %1853 = vmatpush3.bf16.msra.mxu0 %v1970_v3 }
 0x3d7   : > { %1854 = vmatprep.subr.bf16.mxu0 %v2123_v2 }
 0x3da   : > { %1855 = vmatpush3.bf16.msra.mxu0 %v1971_v5 }
 0x45e   : > { %v845_v28 = vpop.f32.mrf.mxu0 }
 0x460   : > { %v1806_v29 = vpop.f32.mrf.mxu0 }
 0x462   : > { %v848_v30 = vpop.f32.mrf.mxu0 }
 0x464   : > { %v1807_v31 = vpop.f32.mrf.mxu0 }
 0x466   : > { %v956_v32 = vpop.f32.mrf.mxu0 }
 0x467   : > { %1183 = vrot.lane.b32.xlu1 %v956_v32, %s2136_s12 }
 0x468   : > { %v1818_v33 = vpop.f32.mrf.mxu0 }
 0x46a   : > { %v959_v34 = vpop.f32.mrf.mxu0 }
 0x46c   : > { %v1819_v35 = vpop.f32.mrf.mxu0 }
 0x48b   : > { %v1066_v38 = vpop.f32.mrf.mxu0 }
 0x48c   : > { %1187 = vrot.lane.b32.xlu0 %v1066_v38, %s2137_s20 }
 0x48d   : > { %v1830_v39 = vpop.f32.mrf.mxu0 }
 0x48f   : > { %v1069_v40 = vpop.f32.mrf.mxu0 }
 0x491   : > { %v1831_v41 = vpop.f32.mrf.mxu0 }
 0x495   : > { %v1176_v42 = vpop.f32.mrf.mxu0 }
 0x496   : > { %1191 = vrot.lane.b32.xlu1 %v1176_v42, %s2138_s3 }
 0x497   : > { %v1842_v43 = vpop.f32.mrf.mxu0 }
 0x498   : > { %v1747_v43 = vld [vmem:[%s656_s22] ss:$0 sm:$0xff] }
 0x499   : > { %v1179_v44 = vpop.f32.mrf.mxu0 }
 0x49b   : > { %v1843_v45 = vpop.f32.mrf.mxu0 }
 0x49c   : > { %v1748_v45 = vld [vmem:[%s659_s6] ss:$0 sm:$0xff] }
 0x4d9   : > { %v1184_v46 = vpop.permute.xlu1 %1183 }
 0x4da   : > { %v1194_v48 = vsel %vm743_vm3, %v845_v28, %v1184_v46 }
 0x4fe   : > { %v1188_v47 = vpop.permute.xlu0 %1187 }
 0x4ff   : > { %v1196_v49 = vsel %vm1195_vm5, %v1194_v48, %v1188_v47 }
 0x508   : > { %v1192_v50 = vpop.permute.xlu1 %1191 }
 0x509   : > { %v1198_v51 = vsel %vm1197_vm6, %v1196_v49, %v1192_v50 }
 0x50a   : > { %v1199_v52 = vpack.c.bf16 %v1198_v51, %v1198_v51 }
 0x50c   : > { %1849 = vmatmul.mubr.msk.bf16.vlgmr.msra.gmra.mxu1 %vm693_vm2, %v1199_v52 }
 0x50d   : > { %1868 = vmatprep.mubr.msk.bf16.mxu1 %vm2124_vm1, %v2123_v2 }
 0x5cc   : > { %v1260_v54 = vpop.f32.mrf.mxu1 }
 0x5cd   : > { %v1261_v55 = vadd.f32 %v1731_v53, %v1260_v54 }
 0x5ce   : > { %v1850_v56 = vpop.f32.mrf.mxu1 }
 0x5cf   : > { %v1266_v57 = vadd.f32 %v1261_v55, %v2380_v4  ;;  %v1972_v4 = vld [vmem:[%s2359_s27 + $0x18] sm:$0xff]  }
 0x5d0   : > { %v1263_v58 = vpop.f32.mrf.mxu1  ;;  %1861 = vmatpush3.bf16.msra.mxu1 %v1972_v4 }
 0x5d1   : > { %v1269_v59 = vsel %vm693_vm2, %v1266_v57, 0.0  ;;  %1862 = vmatprep.subr.bf16.mxu1 %v2123_v2 }
 0x5d2   : > { %1270 = vadd.xlane.f32.xlu0 %v1269_v59  ;;  %v1851_v60 = vpop.f32.mrf.mxu1 }
 0x5d4   : > { %1863 = vmatpush3.bf16.msra.mxu1 %v1973_v6 }
 0x5d5   : > { %1864 = vmatprep.subr.bf16.mxu1 %v2123_v2 }
 0x5d8   : > { %1865 = vmatpush3.bf16.msra.mxu1 %v1974_v17 }
 0x5d9   : > { %1866 = vmatprep.subr.bf16.mxu1 %v2123_v2  ;;  %v1741_v2 = vld [vmem:[%s653_s23] ss:$0 sm:$0xff] }
 0x5dc   : > { %1867 = vmatpush3.bf16.msra.mxu1 %v1975_v18 }
 0x65b   : > { %v1271_v61 = vpop.xlane.xlu0 %1270 }
 0x65c   : > { %v1273_v62 = vmul.f32 0.03125, %v1271_v61 }
 0x65e   : > { %v1274_v63 = vsub.f32 %v1266_v57, %v1273_v62 }
 0x660   : > { %v1275_v0 = vmul.f32 %v1274_v63, %v1274_v63 }
 0x662   : > { %v1276_v1 = vsel %vm693_vm2, %v1275_v0, 0.0 }
 0x663   : > { %1277 = vadd.xlane.f32.xlu1 %v1276_v1 }
 0x6ec   : > { %v1278_v7 = vpop.xlane.xlu1 %1277 }
 0x6ed   : > { %v1279_v8 = vmul.f32 0.03125, %v1278_v7 }
 0x6ef   : > { %v1280_v9 = vadd.f32 1e-05, %v1279_v8 }
 0x6f1   : > { %1992 = vrsqrt.f32 %v1280_v9 }
 0x6fe   : > { %v1993_v10 = vpop.eup %1992 }
 0x6ff   : > { %v1282_v13 = vmul.f32 %v1993_v10, %v1274_v63 }
 0x701   : > { %v1289_v15 = vmul.f32 %v1735_v12, %v1282_v13 }
 0x703   : > { %v1296_v11 = vadd.f32 %v1736_v14, %v1289_v15 }
 0x705   : > { %v1297_v16 = vpack.c.bf16 %v1296_v11, %v1296_v11 }
 0x707   : > { %1857 = vmatmul.mubr.msk.bf16.vlgmr.msra.gmra.mxu0 %vm693_vm2, %v1297_v16 }
 0x7c7   : > { %v1358_v20 = vpop.f32.mrf.mxu0 }
 0x7c8   : > { %v1359_v21 = vadd.f32 %v1737_v19, %v1358_v20 }
 0x7c9   : > { %v1858_v22 = vpop.f32.mrf.mxu0 }
 0x7ca   : > { %v1364_v23 = vmax.f32 %v1359_v21, 0.0 }
 0x7cb   : > { %v1361_v24 = vpop.f32.mrf.mxu0 }
 0x7cc   : > { %v1365_v25 = vpack.c.bf16 %v1364_v23, %v1364_v23 }
 0x7cd   : > { %v1859_v26 = vpop.f32.mrf.mxu0 }
 0x7ce   : > { %1869 = vmatmul.mubr.msk.bf16.vlgmr.msra.gmra.mxu1 %vm1405_vm7, %v1365_v25 }
 0x88e   : > { %v1443_v27 = vpop.f32.mrf.mxu1 }
 0x88f   : > { %v1444_v28 = vadd.f32 %v1741_v2, %v1443_v27 }
 0x890   : > { %v1870_v29 = vpop.f32.mrf.mxu1 }
 0x891   : > { %v1449_v30 = vadd.f32 %v1444_v28, %v1296_v11 }
 0x892   : > { %v1446_v31 = vpop.f32.mrf.mxu1 }
 0x893   : > { %v1452_v32 = vsel %vm693_vm2, %v1449_v30, 0.0 }
 0x894   : > { %1453 = vadd.xlane.f32.xlu0 %v1452_v32  ;;  %v1871_v33 = vpop.f32.mrf.mxu1 }
 0x91d   : > { %v1454_v34 = vpop.xlane.xlu0 %1453 }
 0x91e   : > { %v1455_v35 = vmul.f32 0.03125, %v1454_v34 }
 0x920   : > { %v1456_v36 = vsub.f32 %v1449_v30, %v1455_v35 }
 0x922   : > { %v1457_v37 = vmul.f32 %v1456_v36, %v1456_v36 }
 0x924   : > { %v1458_v38 = vsel %vm693_vm2, %v1457_v37, 0.0 }
 0x925   : > { %1459 = vadd.xlane.f32.xlu0 %v1458_v38 }
 0x9ae   : > { %v1460_v39 = vpop.xlane.xlu0 %1459 }
 0x9af   : > { %v1461_v40 = vmul.f32 0.03125, %v1460_v39 }
 0x9b1   : > { %v1462_v41 = vadd.f32 1e-05, %v1461_v40 }
 0x9b3   : > { %1994 = vrsqrt.f32 %v1462_v41 }
 0x9c0   : > { %v1995_v42 = vpop.eup %1994 }
 0x9c1   : > { %v1464_v44 = vmul.f32 %v1995_v42, %v1456_v36 }
 0x9c3   : > { %v1471_v46 = vmul.f32 %v1747_v43, %v1464_v44  ;;  %1483 = sbr.rel (%p1749_p11) target bundleno = 2512 (0x9d0), region = 84 }
 0x9c5   : > { %v1478_v47 = vadd.f32 %v1748_v45, %v1471_v46 }
 0x9c7   : > { %1479 = vst.msk [vmem:[#allocation2] sm:$0xff] %vm693_vm2, %v1478_v47 }
 0x9ce   : > { %v1484_v48 = vld [vmem:[#allocation2] sm:$0xff] }
 0x9cf   : > { %1485 = vst.msk [vmem:[%s2373_s11] sm:$0xff] %vm693_vm2, %v1484_v48 }
 0x9d0 PF: > { %s2633_s0 = sld [smem:[#allocation12_spill]]  ;;  %s1500_s30 = sshll.u32 %s2373_s11, 4  ;;  %s1501_s30 = int_to_ptr.vmem [resolvable:$true] %s1500_s30 }
 0x9d1   : > { %s2634_s22 = sld [smem:[#allocation21_spill]]  ;;  %s2024_s25 = scalar_lea.vmem %s1501_s30, 128 }
 0x9d2   : > { %s2636_s6 = sld [smem:[#allocation30_spill]]  ;;  %p2025_p1 = scmp.ne.s32.totalorder %s1501_s30, %s2024_s25 }
 0x9d3   : > { %s2139_s28 = smov [#allocation6]  }
 0x9d4   : > { %p2026_p2 = pnand %p2025_p1, %p2273_p10  ;;  %s2028_s24 = sshll.u32 %s2139_s28, 4  ;;  %s2029_s24 = int_to_ptr.vmem [resolvable:$false] %s2028_s24 }
 0x9d5   : > { %s2030_s21 = scalar_lea.vmem %s2029_s24, 256  ;;  %p2031_p5 = scmp.lt.s32.totalorder %s1501_s30, %s2029_s24 }
 0x9d6   : > { %s1751_s15 = sshll.u32 %s2633_s0, 7  ;;  %p2027_p4 = pneg %p2026_p2 }
 0x9d7   : > { %s1487_s16 = scalar_lea.sflag [#allocation5], %s2634_s22  ;;  %p2032_p6 = scmp.lt.s32.totalorder %s2030_s21, %s2024_s25 }
 0x9d8   : > { %s1498_s29 = scalar_lea.hbm %s2636_s6, %s1751_s15 }
 0x9d9   : > { %p2033_p7 = por %p2032_p6, %p2031_p5 }
 0x9db   : > { %p2034_p8 = pnand %p2033_p7, %p2027_p4 }
 0x9dd   : > { %2037 = shalt.err (!%p2034_p8)
}
 0x9de   : > { %s2038_s14 = scalar_lea.hbm %s1498_s29, 128  ;;  %s2042_s26 = scalar_lea.hbm %s2636_s6, 256 }
 0x9df   : > { %p2039_p12 = scmp.ne.s32.totalorder %s1498_s29, %s2038_s14  ;;  %p2043_p0 = scmp.lt.s32.totalorder %s1498_s29, %s2636_s6 }
 0x9e0   : > { %p2044_p9 = scmp.lt.s32.totalorder %s2042_s26, %s2038_s14 }
 0x9e1   : > { %p2040_p3 = pnand %p2039_p12, %p2273_p10 }
 0x9e2   : > { %p2045_p11 = por %p2044_p9, %p2043_p0 }
 0x9e3   : > { %p2041_p13 = pneg %p2040_p3 }
 0x9e5   : > { %p2046_p1 = pnand %p2045_p11, %p2041_p13 }
 0x9e7   : > { %2049 = shalt.err (!%p2046_p1)
}
 0x9e8   : > { %1874 = dma.vmem_to_hbm [thread:$0]  (%p2273_p10), %s1501_s30, 128, %s1498_s29, %s1487_s16  }
 0x9e9 PF: > { %s2637_s1 = sld [smem:[#allocation15_spill]] }
 0x9ea   : > { %s2638_s27 = sld [smem:[#allocation9_spill]] }
 0x9eb   : > { %s2639_s23 = sld [smem:[#allocation19_spill]] }
 0x9ef   : > { %p1885_p2 = scmp.ge.s32.totalorder %s2637_s1, 2 }
 0x9f0   : > { %s1512_s12 = sand.u32 1, %s2638_s27  }
 0x9f1   : > { %p2640_p4 = scmp.ne.s32.totalorder %s2639_s23, 0  ;;  %s1513_s20 = scalar_lea.sflag [#allocation5], %s1512_s12 }
 0x9f3   : > { %p1881_p5 = pnand %p1885_p2, %p2640_p4 }
 0x9f5   : > { %p1882_p6 = pneg %p1881_p5 }
 0x9f7   : > { %2087 = dma.done.wait (%p1882_p6), %s1513_s20, 128  }
 0x9f8   : > { %2089 = vsyncadd (%p1882_p6), %s1513_s20, 4294967168  ;;  %s29_s15 = sadd.s32 1, %s2637_s1   ;;  %s2641_s25 = sld [smem:[#allocation10_spill]] }
 0x9f9   : > { %p26_p7 = scmp.ge.s32.totalorder %s29_s15, 6   ;;  %s2642_s26 = sld [smem:[#allocation11_spill]] }
 0x9fa   : > { %s2643_s27 = sld [smem:[#allocation20_spill]] }
 0x9fb   : > { %s2644_s28 = sld [smem:[#allocation13_spill]]  ;;  %28 = sbr.rel (!%p26_p7) target bundleno = 17 (0x11), region = 161 }
 0x9fc   : > { %s2645_s29 = sld [smem:[#allocation14_spill]] }
 0x9fd   : > { %s2646_s30 = sld [smem:[#allocation16_spill]] }
 0x9fe   : > { %s2647_s14 = sld [smem:[#allocation17_spill]] }
 0xa00   :  { %1518 = vsyncpa [#allocation4], 1 }
 0xa01   :  { %1520 = vsyncpa [#allocation4 + $0x1], 1 }
 0xa02   :  { %1521 = vsyncpa [#allocation5], 1 }
 0xa03   :  { %1523 = vsyncpa [#allocation5 + $0x1], 1 }

</bundles_post_ra>
